<compile_context>
chip_gen: v6e
topology: v6e:2x2x1
jax: 0.10.0
libtpu: 0.0.40
codegen_flags: <defaults>
</compile_context>

<pallas_src>
import math
import jax
import jax.numpy as jnp
from jax.experimental import pallas as pl
from jax.experimental.pallas import tpu as pltpu

# irreps_x   = "8x0e + 8x1o"   -> dim 8 + 24 = 32
# irreps_out = "16x0e + 16x1o" -> dim 16 + 48 = 64
IRREPS_X = [(8, 0), (8, 1)]
IRREPS_OUT = [(16, 0), (16, 1)]


def irreps_dim(irreps):
    return sum(mul * (2 * l + 1) for mul, l in irreps)


def init_linear_weights(key, irreps_in, irreps_out):
    """Deterministic per-irrep mixing weights (e3nn init: standard normal)."""
    ws = []
    for (mi, li), (mo, lo) in zip(irreps_in, irreps_out):
        assert li == lo, "paths only connect matching irreps"
        key, sub = jax.random.split(key)
        ws.append(jax.random.normal(sub, (mi, mo), dtype=jnp.float32))
    return ws


def build_dense_weight(ws, irreps_in, irreps_out):
    """Assemble the block-diagonal dense weight: kron(w/sqrt(mul_in), I_{2l+1})."""
    din, dout = irreps_dim(irreps_in), irreps_dim(irreps_out)
    W = jnp.zeros((din, dout), jnp.float32)
    ri = ro = 0
    for w, (mi, li), (mo, lo) in zip(ws, irreps_in, irreps_out):
        d = 2 * li + 1
        block = jnp.kron(w / math.sqrt(mi), jnp.eye(d, dtype=jnp.float32))
        W = W.at[ri:ri + mi * d, ro:ro + mo * d].set(block)
        ri += mi * d
        ro += mo * d
    return W


def _linear_kernel(x_ref, w_ref, o_ref):
    # One node-tile of the equivariant linear: y = x @ W (MXU, f32 accumulate).
    o_ref[...] = jnp.dot(
        x_ref[...], w_ref[...], preferred_element_type=jnp.float32
    ).astype(o_ref.dtype)


def _round_up(a, b):
    return ((a + b - 1) // b) * b


def make_self_connection_linear_intro(W, *, key_x="node_feature",
                                      tile_nodes=8192, compute_dtype=None):
    """Build the forward fn once (weight packing hoisted out of the call path)."""
    W = jnp.asarray(W)
    if compute_dtype is not None:
        # Optional bf16 path: halves HBM traffic of the mem-bound matmul.
        W = W.astype(compute_dtype)
    din, dout = W.shape

    # Pack consecutive nodes into the lane axis so the input row is 128-lane
    # dense and the output row is an unmasked multiple of 128.
    if din % 128 == 0:
        pack = 1
    elif 128 % din == 0:
        pack = 128 // din
    else:
        # TODO(synk): generalize lane packing for irreps dims that don't divide 128.
        pack = 1
    pdin, pdout = din * pack, dout * pack

    # kron(I_pack, W): block-diagonal, applies W independently to each packed node.
    W_packed = jnp.kron(jnp.eye(pack, dtype=W.dtype), W) if pack > 1 else W

    target_rows = max(8, _round_up(max(tile_nodes // pack, 1), 8))

    def forward(data):
        x = data[key_x]
        if compute_dtype is not None:
            x = x.astype(compute_dtype)
        N, d = x.shape
        assert d == din, f"expected node feature dim {din}, got {d}"

        # Minimal padding: only to a multiple of 8 packed rows (pack*8 nodes),
        # never to a multiple of the tile size.
        rows = -(-N // pack)
        rows_pad = _round_up(max(rows, 8), 8)
        n_pad = rows_pad * pack
        x_pad = x if n_pad == N else jnp.pad(x, ((0, n_pad - N), (0, 0)))
        x_packed = x_pad.reshape(rows_pad, pdin)   # contiguous reshape

        # Tile selection: large tiles for HBM efficiency, but at least two grid
        # steps whenever there is enough work so v7x megacore splits the grid.
        if rows_pad > 8:
            tile_rows = min(target_rows, _round_up(-(-rows_pad // 2), 8))
        else:
            tile_rows = rows_pad
        grid = (pl.cdiv(rows_pad, tile_rows),)     # uneven last block is OK

        itemsize = jnp.dtype(x_packed.dtype).itemsize
        cost = pl.CostEstimate(
            flops=2 * rows_pad * pdin * pdout,
            transcendentals=0,
            bytes_accessed=(rows_pad * (pdin + pdout) + pdin * pdout) * itemsize,
        )

        y_packed = pl.pallas_call(
            _linear_kernel,
            out_shape=jax.ShapeDtypeStruct((rows_pad, pdout), x_packed.dtype),
            grid=grid,
            in_specs=[
                pl.BlockSpec((tile_rows, pdin), lambda i: (i, 0)),
                pl.BlockSpec((pdin, pdout), lambda i: (0, 0)),  # weight resident
            ],
            out_specs=pl.BlockSpec((tile_rows, pdout), lambda i: (i, 0)),
            compiler_params=pltpu.CompilerParams(
                dimension_semantics=("parallel",),
            ),
            cost_estimate=cost,
        )(x_packed, W_packed.astype(x_packed.dtype))

        # Unpack back to the e3nn [N, dout] layout; drop padded rows if any.
        y = y_packed.reshape(n_pad, dout)
        if n_pad != N:
            y = y[:N]

        out = dict(data)
        out["self_connection_temp"] = y
        return out

    return forward


if __name__ == "__main__":
    key = jax.random.PRNGKey(0)
    key_w, key_x1, key_x2, key_x3 = jax.random.split(key, 4)

    din = irreps_dim(IRREPS_X)     # 32
    dout = irreps_dim(IRREPS_OUT)  # 64

    ws = init_linear_weights(key_w, IRREPS_X, IRREPS_OUT)
    W = build_dense_weight(ws, IRREPS_X, IRREPS_OUT)

    module = make_self_connection_linear_intro(W)

    # 1) Small, ragged node count (minimal pad, 2-step grid).
    N1 = 100
    x1 = jax.random.normal(key_x1, (N1, din), dtype=jnp.float32)
    y1 = jax.block_until_ready(module({"node_feature": x1})["self_connection_temp"])
    assert y1.shape == (N1, dout)
    assert jnp.allclose(y1, x1 @ W, atol=1e-4, rtol=1e-4)

    # 2) Aligned node count (no padding at all, even 2-step grid).
    N2 = 2560
    x2 = jax.random.normal(key_x2, (N2, din), dtype=jnp.float32)
    y2 = jax.block_until_ready(module({"node_feature": x2})["self_connection_temp"])
    assert y2.shape == (N2, dout)
    assert jnp.allclose(y2, x2 @ W, atol=1e-4, rtol=1e-4)

    # 3) Exercise the uneven-last-block grid path with a small tile override.
    module_small = make_self_connection_linear_intro(W, tile_nodes=128)
    N3 = 1030
    x3 = jax.random.normal(key_x3, (N3, din), dtype=jnp.float32)
    y3 = jax.block_until_ready(module_small({"node_feature": x3})["self_connection_temp"])
    assert y3.shape == (N3, dout)
    assert jnp.allclose(y3, x3 @ W, atol=1e-4, rtol=1e-4)

    print("KERNEL_OK")
</pallas_src>

<mosaic_0001>
module attributes {stable_mosaic.version = 11 : i64} {
  func.func @_linear_kernel(%arg0: i32, %arg1: memref<16x128xf32, #tpu.memory_space<vmem>>, %arg2: memref<128x256xf32, #tpu.memory_space<vmem>>, %arg3: memref<16x256xf32, #tpu.memory_space<vmem>>) attributes {dimension_semantics = [#tpu.dimension_semantics<parallel>], iteration_bounds = array<i64: 2>, scalar_prefetch = 0 : i64, scratch_operands = 0 : i64, tpu.core_type = #tpu.core_type<tc>, window_params = [{transform_indices = @transform_0, window_bounds = array<i64: 16, 128>}, {pipeline_mode = #tpu.pipeline_mode<synchronous>, transform_indices = @transform_1, window_bounds = array<i64: 128, 256>}, {transform_indices = @transform_2, window_bounds = array<i64: 16, 256>}]} {
    %c0 = arith.constant 0 : index
    %c0_0 = arith.constant 0 : index
    %0 = vector.load %arg1[%c0, %c0_0] : memref<16x128xf32, #tpu.memory_space<vmem>>, vector<16x128xf32>
    %c0_1 = arith.constant 0 : index
    %c0_2 = arith.constant 0 : index
    %1 = vector.load %arg2[%c0_1, %c0_2] : memref<128x256xf32, #tpu.memory_space<vmem>>, vector<128x256xf32>
    %cst = arith.constant dense<0.000000e+00> : vector<16x256xf32>
    %2 = tpu.matmul %0, %1, %cst {dimension_numbers = #tpu.dot_dimension_numbers<[1], [0], [0], [1], [0, 0, 1, 1], [], []>} : vector<16x128xf32>, vector<128x256xf32>, vector<16x256xf32> -> vector<16x256xf32>
    %c0_3 = arith.constant 0 : index
    %c0_4 = arith.constant 0 : index
    %3 = vector.load %arg3[%c0_3, %c0_4] : memref<16x256xf32, #tpu.memory_space<vmem>>, vector<16x256xf32>
    tpu.vector_store %arg3[%c0_3, %c0_4], %2 {strides = array<i32>} : memref<16x256xf32, #tpu.memory_space<vmem>>, vector<16x256xf32>,
    return
  }
  func.func @transform_0(%arg0: i32) -> (i32, i32) {
    %c0_i32 = arith.constant 0 : i32
    %c0_i32_0 = arith.constant 0 : i32
    return %arg0, %c0_i32 : i32, i32
  }
  func.func @transform_1(%arg0: i32) -> (i32, i32) {
    %c0_i32 = arith.constant 0 : i32
    %c0_i32_0 = arith.constant 0 : i32
    %c0_i32_1 = arith.constant 0 : i32
    return %c0_i32, %c0_i32_0 : i32, i32
  }
  func.func @transform_2(%arg0: i32) -> (i32, i32) {
    %c0_i32 = arith.constant 0 : i32
    %c0_i32_0 = arith.constant 0 : i32
    return %arg0, %c0_i32 : i32, i32
  }
}

</mosaic_0001>

<bundles_post_ra>
// kernel: tpu_custom_call.1
= control target key start
LH: loop header
LB: loop body
LE: loop exit
PB: predicated region body
PF: predicated region fallthrough
CT: control target
= control target key end

     0   :  { %7 = vsyncpa [#allocation3], 0  ;;  %s839_s0 = inlined_call_operand.hbm [shape: f32[32,128], index: 0, kind: input, shape index: {}]   ;;  %s840_s1 = inlined_call_operand.hbm [shape: f32[128,256], index: 1, kind: input, shape index: {}]   ;;  %s841_s2 = inlined_call_operand.hbm [shape: f32[32,256], index: 2, kind: output, shape index: {}]  }
   0x1   :  { %9 = vsyncpa [#allocation3 + $0x1], 0 }
   0x2   :  { %10 = vsyncpa [#allocation6], 0 }
   0x3   :  { %11 = vsyncpa [#allocation4], 0 }
   0x4   :  { %13 = vsyncpa [#allocation4 + $0x1], 0  ;;  %s657_s9 = smov 0   ;;  %s659_s10 = smov 0  }
   0x5   :  { %s661_s11 = smov 0   ;;  %s663_s12 = smov 0  }
   0x6 LB: > { %s678_s13 = sadd.s32 4294967295, %s630_s12   ;;  %s392_s14 = sadd.s32 4294967294, %s630_s12   ;;  %s630_s12 = sphi %s663_s12, %s863_s12   ;;  %s626_s11 = sphi %s661_s11, %s862_s11   ;;  %s622_s10 = sphi %s659_s10, %s861_s10   ;;  %s618_s9 = sphi %s657_s9, %s860_s9  }
   0x7   : > { %p39_p0 = scmp.ne.s32.totalorder %s622_s10, %s618_s9  ;;  %p842_p1 = scmp.eq.s32.totalorder %s678_s13, 0 }
   0x8   : > { %p90_p3 = scmp.eq.s32.totalorder %s392_s14, 1  ;;  %p393_p5 = scmp.ge.s32.totalorder %s630_s12, 1 }
   0x9   : > { %p687_p4 = por %p842_p1, %p39_p0  ;;  %p97_p7 = scmp.lt.s32.totalorder %s630_s12, 3 }
   0xa   : > { %p692_p6 = por %p90_p3, %p39_p0  ;;  %s632_s18 = smov [#allocation5]  }
   0xb   : > { %s846_s15 = scalar_select %p687_p4, 1, 0 }
   0xc   : > { %s847_s16 = scalar_select %p692_p6, 1, 0 }
   0xd   : > { %p697_p8 = pnand %p393_p5, %p97_p7  ;;  %s109_s19 = sshll.u32 %s632_s18, 4  ;;  %s110_s19 = int_to_ptr.vmem [resolvable:$true] %s109_s19 }
   0xe   : > { %s711_s21 = sadd.s32 1, %s630_s12   ;;  %s26_s22 = sadd.s32 1, %s626_s11 }
   0xf   : > { %s848_s17 = scalar_select %p697_p8, 1, 0 }
  0x10   : > { %p452_p9 = pneg %p697_p8  ;;  %s23_s23 = ssub.s32 %s630_s12, %s711_s21 }
  0x11   : > { %s519_s24 = scalar_lea.vmem %s110_s19, 4096  ;;  %p527_p5 = scmp.lt.s32.totalorder %s110_s19, %s110_s19 }
  0x12   : > { %p706_p11 = pnand %p452_p9, %p842_p1  ;;  %p520_p13 = scmp.ne.s32.totalorder %s110_s19, %s519_s24 }
  0x13   : > { %p528_p7 = scmp.lt.s32.totalorder %s519_s24, %s519_s24 }
  0x14   : > { %p510_p12 = pneg %p706_p11 }
  0x15   : > { %p529_p10 = por %p528_p7, %p527_p5 }
  0x16   : > { %p522_p0 = pnand %p520_p13, %p510_p12 }
  0x18   : > { %p523_p3 = pneg %p522_p0 }
  0x1a   : > { %p530_p2 = pnand %p529_p10, %p523_p3 }
  0x1c   : > { %533 = shalt.err (!%p530_p2)
}
  0x1d   : > { %s633_s25 = smov 256   ;;  %s634_s26 = smov 16  }
  0x1e   : > { %455 = dma.hbm_to_vmem [thread:$0]  (!%p706_p11), %s840_s1, 4096, %s110_s19, [#allocation6], %s633_s25, %s633_s25, %s634_s26  }
  0x1f   : > { %p24_p9 = scmp.eq.s32.totalorder %s23_s23, 0  ;;  %p33_p12 = scmp.ne.s32.totalorder %s626_s11, %s622_s10 }
  0x20   : > { %p34_p10 = scmp.eq.s32.totalorder %s630_s12, 0  ;;  %p465_p2 = scmp.lt.s32.totalorder %s630_s12, 2 }
  0x21   : > { %s728_s29 = scalar_select %p24_p9, %s626_s11, %s26_s22  }
  0x22   : > { %p35_p13 = por %p34_p10, %p33_p12  ;;  %p850_p0 = scmp.eq.s32.totalorder %s678_s13, 1 }
  0x23   : > { %s123_s3 = sand.u32 1, %s626_s11   ;;  %s409_s4 = sshll.u32 %s630_s12, 8 }
  0x24   : > { %p732_p3 = por %p850_p0, %p33_p12  ;;  %s396_s5 = sshll.u32 %s123_s3, 4 }
  0x25   : > { %s741_s8 = scalar_lea.hbm %s839_s0, %s409_s4  ;;  %s127_s14 = scalar_lea.vmem [#allocation2], %s396_s5 }
  0x26   : > { %s851_s30 = scalar_select %p732_p3, 1, 0 }
  0x27   : > { %s134_s18 = sshll.u32 %s127_s14, 4  ;;  %p743_p11 = pnand %p465_p2, %p35_p13  ;;  %s747_s18 = int_to_ptr.vmem [resolvable:$true] %s134_s18 }
  0x28   : > { %s749_s20 = scalar_lea.sflag [#allocation3], %s123_s3  ;;  %s534_s22 = scalar_lea.hbm %s741_s8, 256 }
  0x29   : > { %p535_p5 = scmp.ne.s32.totalorder %s741_s8, %s534_s22  ;;  %p536_p7 = pneg %p743_p11 }
  0x2a   : > { %s539_s25 = scalar_lea.hbm %s839_s0, 512  ;;  %p540_p10 = scmp.lt.s32.totalorder %s741_s8, %s839_s0 }
  0x2b   : > { %p537_p9 = pnand %p536_p7, %p535_p5  ;;  %p541_p2 = scmp.lt.s32.totalorder %s539_s25, %s534_s22 }
  0x2d   : > { %p538_p12 = pneg %p537_p9  ;;  %p542_p13 = por %p541_p2, %p540_p10 }
  0x2f   : > { %p543_p0 = pnand %p542_p13, %p538_p12 }
  0x31   : > { %546 = shalt.err (!%p543_p0)
}
  0x32   : > { %s547_s28 = scalar_lea.vmem %s747_s18, 256  ;;  %s635_s3 = smov [#allocation2]  }
  0x33   : > { %p548_p1 = scmp.ne.s32.totalorder %s747_s18, %s547_s28  ;;  %s552_s4 = sshll.u32 %s635_s3, 4  ;;  %s553_s4 = int_to_ptr.vmem [resolvable:$false] %s552_s4 }
  0x34   : > { %s554_s5 = scalar_lea.vmem %s553_s4, 512  ;;  %p555_p9 = scmp.lt.s32.totalorder %s747_s18, %s553_s4 }
  0x35   : > { %p550_p6 = pnand %p548_p1, %p536_p7  ;;  %p556_p3 = scmp.lt.s32.totalorder %s554_s5, %s547_s28 }
  0x37   : > { %p551_p5 = pneg %p550_p6  ;;  %p557_p4 = por %p556_p3, %p555_p9 }
  0x39   : > { %p558_p8 = pnand %p557_p4, %p551_p5 }
  0x3b   : > { %561 = shalt.err (!%p558_p8)
}
  0x3c   : > { %s636_s6 = smov 128   ;;  %s637_s7 = smov 8  }
  0x3d   : > { %459 = dma.hbm_to_vmem [thread:$0]  (!%p743_p11), %s741_s8, 256, %s747_s18, %s749_s20, %s636_s6, %s636_s6, %s637_s7  }
  0x3e   : > { %p853_p1 = scmp.ne.s32.totalorder %s848_s17, 0 }
  0x3f   : > { %s773_s14 = sand.u32 (!%p853_p1), 1, %s622_s10   ;;  %p854_p4 = scmp.ne.s32.totalorder (!%p853_p1), %s846_s15, 0 }
  0x40   : > { %146 = sbr.rel (%p853_p1) target bundleno = 316 (0x13c), region = 28  ;;  %s400_s22 = sshll.u32 (!%p853_p1), %s773_s14, 4 }
  0x41   : > { %s149_s23 = scalar_lea.sflag (!%p853_p1), [#allocation3], %s773_s14  ;;  %s777_s24 = scalar_lea.vmem (!%p853_p1), [#allocation2], %s400_s22 }
  0x45   : > { %605 = dma.done.wait (%p854_p4), %s149_s23, 256  }
  0x46   : > { %607 = vsyncadd (%p854_p4), %s149_s23, 4294967040  ;;  %p855_p6 = scmp.eq.s32.totalorder %s678_s13, 0 }
  0x48   : > { %609 = dma.done.wait (%p855_p6), [#allocation6], 4096   ;;  %p856_p8 = pmov %p855_p6 }
  0x49   : > { %v638_v0 = vmov 0.0   ;;  %v212_v1 = vld [vmem:[#allocation5 + $0xf8] sm:$0xff]  ;;  %v211_v2 = vld [vmem:[#allocation5 + $0xf0] sm:$0xff]  ;;  %v210_v3 = vld [vmem:[#allocation5 + $0xe8] sm:$0xff]  ;;  %s402_s15 = sshll.u32 %s773_s14, 5  ;;  %s411_s18 = sshll.u32 %s678_s13, 9 }
  0x4a   : > { %611 = vsyncadd (%p856_p8), [#allocation6], 4294963200  ;;  %277 = vmatprep.mubr.f32.mxu0 %v638_v0  ;;  %283 = vmatprep.mubr.f32.mxu1 %v638_v0  ;;  %v209_v4 = vld [vmem:[#allocation5 + $0xe0] sm:$0xff]  ;;  %v208_v5 = vld [vmem:[#allocation5 + $0xd8] sm:$0xff]  ;;  %s176_s17 = scalar_lea.vmem [#allocation7], %s402_s15  ;;  %s796_s25 = scalar_lea.hbm %s841_s2, %s411_s18 }
  0x4b   : > { %213 = vmatprep.subr.mxu0 %v212_v1  ;;  %412 = vmatprep.subr.mxu1 %v212_v1  ;;  %v207_v6 = vld [vmem:[#allocation5 + $0xd0] sm:$0xff]  ;;  %v206_v7 = vld [vmem:[#allocation5 + $0xc8] sm:$0xff]  ;;  %v205_v8 = vld [vmem:[#allocation5 + $0xc0] sm:$0xff]  ;;  %s309_s8 = sshll.u32 %s176_s17, 4  ;;  %s295_s26 = scalar_lea.sflag [#allocation4], %s773_s14  ;;  %s791_s8 = int_to_ptr.vmem [resolvable:$true] %s309_s8 }
  0x4c   : > { %214 = vmatpush1.msra.mxu0 %v211_v2  ;;  %428 = vmatpush1.msra.mxu1 %v211_v2  ;;  %v204_v9 = vld [vmem:[#allocation5 + $0xb8] sm:$0xff]  ;;  %v203_v10 = vld [vmem:[#allocation5 + $0xb0] sm:$0xff]  ;;  %v202_v11 = vld [vmem:[#allocation5 + $0xa8] sm:$0xff]  ;;  %s562_s13 = scalar_lea.vmem %s791_s8, 512  ;;  %p857_p11 = scmp.ne.s32.totalorder %s851_s30, 0 }
  0x4d   : > { %215 = vmatprep.subr.mxu0 %v210_v3  ;;  %413 = vmatprep.subr.mxu1 %v210_v3  ;;  %v201_v12 = vld [vmem:[#allocation5 + $0xa0] sm:$0xff]  ;;  %v200_v13 = vld [vmem:[#allocation5 + $0x98] sm:$0xff]  ;;  %v199_v14 = vld [vmem:[#allocation5 + $0x90] sm:$0xff]  ;;  %p563_p3 = scmp.ne.s32.totalorder %s791_s8, %s562_s13  ;;  %s639_s27 = smov [#allocation7]  }
  0x4e   : > { %216 = vmatpush1.msra.mxu0 %v209_v4  ;;  %429 = vmatpush1.msra.mxu1 %v209_v4  ;;  %v198_v15 = vld [vmem:[#allocation5 + $0x88] sm:$0xff]  ;;  %v197_v16 = vld [vmem:[#allocation5 + $0x80] sm:$0xff]  ;;  %v196_v17 = vld [vmem:[#allocation5 + $0x78] sm:$0xff]  ;;  %s566_s28 = sshll.u32 %s639_s27, 4  ;;  %s567_s28 = int_to_ptr.vmem [resolvable:$false] %s566_s28 }
  0x4f   : > { %217 = vmatprep.subr.mxu0 %v208_v5  ;;  %414 = vmatprep.subr.mxu1 %v208_v5  ;;  %v195_v18 = vld [vmem:[#allocation5 + $0x70] sm:$0xff]  ;;  %v194_v19 = vld [vmem:[#allocation5 + $0x68] sm:$0xff]  ;;  %v193_v20 = vld [vmem:[#allocation5 + $0x60] sm:$0xff]  ;;  %p564_p7 = pnand %p563_p3, %p857_p11  ;;  %s568_s3 = scalar_lea.vmem %s567_s28, 1024 }
  0x50   : > { %218 = vmatpush1.msra.mxu0 %v207_v6  ;;  %430 = vmatpush1.msra.mxu1 %v207_v6  ;;  %v192_v21 = vld [vmem:[#allocation5 + $0x58] sm:$0xff]  ;;  %v191_v22 = vld [vmem:[#allocation5 + $0x50] sm:$0xff]  ;;  %v190_v23 = vld [vmem:[#allocation5 + $0x48] sm:$0xff]  ;;  %p569_p10 = scmp.lt.s32.totalorder %s791_s8, %s567_s28  ;;  %p570_p2 = scmp.lt.s32.totalorder %s568_s3, %s562_s13 }
  0x51   : > { %219 = vmatprep.subr.mxu0 %v206_v7  ;;  %415 = vmatprep.subr.mxu1 %v206_v7  ;;  %v189_v24 = vld [vmem:[#allocation5 + $0x40] sm:$0xff]  ;;  %v188_v25 = vld [vmem:[#allocation5 + $0x38] sm:$0xff]  ;;  %v187_v26 = vld [vmem:[#allocation5 + $0x30] sm:$0xff]  ;;  %p565_p12 = pneg %p564_p7 }
  0x52   : > { %220 = vmatpush1.msra.mxu0 %v205_v8  ;;  %431 = vmatpush1.msra.mxu1 %v205_v8  ;;  %v186_v27 = vld [vmem:[#allocation5 + $0x28] sm:$0xff]  ;;  %v185_v28 = vld [vmem:[#allocation5 + $0x20] sm:$0xff]  ;;  %v184_v29 = vld [vmem:[#allocation5 + $0x18] sm:$0xff]  ;;  %p571_p13 = por %p570_p2, %p569_p10 }
  0x53   : > { %221 = vmatprep.subr.mxu0 %v204_v9  ;;  %416 = vmatprep.subr.mxu1 %v204_v9  ;;  %v183_v30 = vld [vmem:[#allocation5 + $0x10] sm:$0xff]  ;;  %v182_v31 = vld [vmem:[#allocation5 + $0x8] sm:$0xff]  ;;  %v181_v32 = vld [vmem:[#allocation5] sm:$0xff] }
  0x54   : > { %222 = vmatpush1.msra.mxu0 %v203_v10  ;;  %432 = vmatpush1.msra.mxu1 %v203_v10  ;;  %v179_v33 = vld [vmem:[%s777_s24] sm:$0xff]  ;;  %v180_v34 = vld [vmem:[%s777_s24 + $0x8] sm:$0xff]  ;;  %p572_p0 = pnand %p571_p13, %p565_p12 }
  0x55   : > { %223 = vmatprep.subr.mxu0 %v202_v11  ;;  %417 = vmatprep.subr.mxu1 %v202_v11 }
  0x56   : > { %224 = vmatpush1.msra.mxu0 %v201_v12  ;;  %433 = vmatpush1.msra.mxu1 %v201_v12 }
  0x57   : > { %225 = vmatprep.subr.mxu0 %v200_v13  ;;  %418 = vmatprep.subr.mxu1 %v200_v13 }
  0x58   : > { %226 = vmatpush1.msra.mxu0 %v199_v14  ;;  %434 = vmatpush1.msra.mxu1 %v199_v14 }
  0x59   : > { %227 = vmatprep.subr.mxu0 %v198_v15  ;;  %419 = vmatprep.subr.mxu1 %v198_v15 }
  0x5a   : > { %228 = vmatpush1.msra.mxu0 %v197_v16  ;;  %435 = vmatpush1.msra.mxu1 %v197_v16 }
  0x5b   : > { %229 = vmatprep.subr.mxu0 %v196_v17  ;;  %420 = vmatprep.subr.mxu1 %v196_v17 }
  0x5c   : > { %230 = vmatpush1.msra.mxu0 %v195_v18  ;;  %436 = vmatpush1.msra.mxu1 %v195_v18 }
  0x5d   : > { %231 = vmatprep.subr.mxu0 %v194_v19  ;;  %421 = vmatprep.subr.mxu1 %v194_v19 }
  0x5e   : > { %232 = vmatpush1.msra.mxu0 %v193_v20  ;;  %437 = vmatpush1.msra.mxu1 %v193_v20 }
  0x5f   : > { %233 = vmatprep.subr.mxu0 %v192_v21  ;;  %422 = vmatprep.subr.mxu1 %v192_v21 }
  0x60   : > { %234 = vmatpush1.msra.mxu0 %v191_v22  ;;  %438 = vmatpush1.msra.mxu1 %v191_v22 }
  0x61   : > { %235 = vmatprep.subr.mxu0 %v190_v23  ;;  %423 = vmatprep.subr.mxu1 %v190_v23 }
  0x62   : > { %236 = vmatpush1.msra.mxu0 %v189_v24  ;;  %439 = vmatpush1.msra.mxu1 %v189_v24 }
  0x63   : > { %237 = vmatprep.subr.mxu0 %v188_v25  ;;  %424 = vmatprep.subr.mxu1 %v188_v25 }
  0x64   : > { %238 = vmatpush1.msra.mxu0 %v187_v26  ;;  %440 = vmatpush1.msra.mxu1 %v187_v26 }
  0x65   : > { %239 = vmatprep.subr.mxu0 %v186_v27  ;;  %425 = vmatprep.subr.mxu1 %v186_v27 }
  0x66   : > { %240 = vmatpush1.msra.mxu0 %v185_v28  ;;  %441 = vmatpush1.msra.mxu1 %v185_v28 }
  0x67   : > { %241 = vmatprep.subr.mxu0 %v184_v29  ;;  %426 = vmatprep.subr.mxu1 %v184_v29 }
  0x68   : > { %242 = vmatpush1.msra.mxu0 %v183_v30  ;;  %442 = vmatpush1.msra.mxu1 %v183_v30 }
  0x69   : > { %243 = vmatprep.subr.mxu0 %v182_v31  ;;  %427 = vmatprep.subr.mxu1 %v182_v31 }
  0x6a   : > { %244 = vmatpush1.msra.mxu0 %v181_v32  ;;  %443 = vmatpush1.msra.mxu1 %v181_v32 }
  0x6b   : > { %278 = vmatmul.mubr.f32.vlgmr.msra.gmra.mxu0 %v179_v33  ;;  %284 = vmatmul.mubr.f32.vlgmr.msra.gmra.mxu1 %v180_v34 }
 0x12b   : > { %v279_v35 = vpop.f32.mrf.mxu0  ;;  %v285_v36 = vpop.f32.mrf.mxu1 }
 0x12c   : > { %290 = vst [vmem:[%s176_s17] sm:$0xff] %v279_v35  ;;  %292 = vst [vmem:[%s176_s17 + $0x10] sm:$0xff] %v285_v36 }
 0x12d   : > { %v281_v37 = vpop.f32.mrf.mxu0  ;;  %v287_v38 = vpop.f32.mrf.mxu1 }
 0x12e   : > { %291 = vst [vmem:[%s176_s17 + $0x8] sm:$0xff] %v281_v37  ;;  %293 = vst [vmem:[%s176_s17 + $0x18] sm:$0xff] %v287_v38 }
 0x12f   : > { %575 = shalt.err (!%p572_p0)
}
 0x130   : > { %s576_s4 = scalar_lea.hbm %s796_s25, 512  ;;  %s580_s7 = scalar_lea.hbm %s841_s2, 1024 }
 0x131   : > { %p577_p5 = scmp.ne.s32.totalorder %s796_s25, %s576_s4  ;;  %p581_p4 = scmp.lt.s32.totalorder %s796_s25, %s841_s2 }
 0x132   : > { %p582_p6 = scmp.lt.s32.totalorder %s580_s7, %s576_s4 }
 0x133   : > { %p578_p9 = pnand %p577_p5, %p857_p11 }
 0x134   : > { %p583_p8 = por %p582_p6, %p581_p4 }
 0x135   : > { %p579_p1 = pneg %p578_p9 }
 0x137   : > { %p584_p3 = pnand %p583_p8, %p579_p1 }
 0x139   : > { %587 = shalt.err (!%p584_p3)
}
 0x13a   : > { %s640_s24 = smov 256   ;;  %s641_s15 = smov 16  }
 0x13b   : > { %450 = dma.vmem_to_hbm [thread:$0]  (%p857_p11), %s791_s8, 512, %s796_s25, %s295_s26, %s640_s24, %s640_s24, %s641_s15  }
 0x13c PF: > { %s324_s17 = sand.u32 1, %s618_s9   ;;  %p858_p7 = scmp.ne.s32.totalorder %s847_s16, 0 }
 0x13d   : > { %p859_p12 = scmp.ge.s32.totalorder %s630_s12, 2  ;;  %s325_s18 = scalar_lea.sflag [#allocation4], %s324_s17 }
 0x13f   : > { %p461_p10 = pnand %p859_p12, %p858_p7 }
 0x141   : > { %p462_p2 = pneg %p461_p10 }
 0x143   : > { %613 = dma.done.wait (%p462_p2), %s325_s18, 512  }
 0x144   : > { %615 = vsyncadd (%p462_p2), %s325_s18, 4294966784  ;;  %p16_p13 = scmp.ge.s32.totalorder %s711_s21, 4   ;;  %s860_s9 = smov %s622_s10 }
 0x145   : > { %s861_s10 = smov %s626_s11  ;;  %s862_s11 = smov %s728_s29 }
 0x146   : > { %s863_s12 = smov %s711_s21  ;;  %18 = sbr.rel (!%p16_p13) target bundleno = 6 (0x6), region = 77 }
 0x14b   :  { %330 = vsyncpa [#allocation3], 1 }
 0x14c   :  { %332 = vsyncpa [#allocation3 + $0x1], 1 }
 0x14d   :  { %333 = vsyncpa [#allocation6], 1 }
 0x14e   :  { %334 = vsyncpa [#allocation4], 1 }
 0x14f   :  { %336 = vsyncpa [#allocation4 + $0x1], 1 }

</bundles_post_ra>
